<compile_context>
chip_gen: v5e
topology: v5e:2x2
jax: 0.10.0
libtpu: 0.0.40
codegen_flags: <defaults>
</compile_context>

<pallas_src>
import jax
import jax.numpy as jnp
from jax.experimental import pallas as pl
from jax.experimental.pallas import tpu as pltpu

POSE_FACTOR = 1.0
BETA_FACTOR = 0.3
TRANS_FACTOR = 0.1


def _scale_kernel(beta_ref, trans_ref, beta_out_ref, trans_out_ref):
    # Two scalar-constant multiplies; constants are folded at trace time.
    beta_out_ref[...] = beta_ref[...] * BETA_FACTOR
    trans_out_ref[...] = trans_ref[...] * TRANS_FACTOR


def optimization_smpl_forward(pose_param, beta_param, trans_param):
    """Pallas equivalent of OptimizationSMPL.forward().

    Inputs are the stored parameters (already divided by their factors).
    Returns (pose * 1.0, beta * 0.3, trans * 0.1).
    """
    pose_param = jnp.asarray(pose_param, jnp.float32)
    beta_param = jnp.asarray(beta_param, jnp.float32)
    trans_param = jnp.asarray(trans_param, jnp.float32)

    # pose * 1.0 is the identity -> bypass.  Guarded so a changed factor is
    # still honored (applied as plain XLA so it fuses into neighbors).
    if POSE_FACTOR != 1.0:
        pose_out = pose_param * POSE_FACTOR
    else:
        pose_out = pose_param

    n_elems = beta_param.size + trans_param.size
    cost = pl.CostEstimate(
        flops=n_elems,                    # one multiply per element
        transcendentals=0,
        bytes_accessed=2 * n_elems * 4,   # read + write, f32
    )

    beta_out, trans_out = pl.pallas_call(
        _scale_kernel,
        out_shape=(
            jax.ShapeDtypeStruct(beta_param.shape, jnp.float32),
            jax.ShapeDtypeStruct(trans_param.shape, jnp.float32),
        ),
        in_specs=[
            pl.BlockSpec(memory_space=pltpu.VMEM),
            pl.BlockSpec(memory_space=pltpu.VMEM),
        ],
        out_specs=(
            pl.BlockSpec(memory_space=pltpu.VMEM),
            pl.BlockSpec(memory_space=pltpu.VMEM),
        ),
        cost_estimate=cost,
    )(beta_param, trans_param)

    return pose_out, beta_out, trans_out


if __name__ == "__main__":
    key = jax.random.PRNGKey(0)
    k_pose, k_beta, k_trans = jax.random.split(key, 3)

    # "Ground-truth" SMPL values passed to __init__ (deterministic, in-script).
    pose = jax.random.normal(k_pose, (1, 72), dtype=jnp.float32) * 0.2
    beta = jax.random.normal(k_beta, (1, 10), dtype=jnp.float32)
    trans = jax.random.normal(k_trans, (1, 3), dtype=jnp.float32) * 0.5

    # Parameters as stored by the module (divided by the factors).
    pose_param = pose / POSE_FACTOR
    beta_param = beta / BETA_FACTOR
    trans_param = trans / TRANS_FACTOR

    out_pose, out_beta, out_trans = optimization_smpl_forward(
        pose_param, beta_param, trans_param)
    jax.block_until_ready((out_pose, out_beta, out_trans))

    # forward() semantics: returns param * factor.
    assert out_pose.shape == (1, 72) and out_pose.dtype == jnp.float32
    assert out_beta.shape == (1, 10) and out_beta.dtype == jnp.float32
    assert out_trans.shape == (1, 3) and out_trans.dtype == jnp.float32
    assert jnp.allclose(out_pose, pose_param * POSE_FACTOR, atol=1e-6)
    assert jnp.allclose(out_beta, beta_param * BETA_FACTOR, atol=1e-6)
    assert jnp.allclose(out_trans, trans_param * TRANS_FACTOR, atol=1e-6)

    print("KERNEL_OK")
</pallas_src>

<mosaic_0001>
module attributes {stable_mosaic.version = 11 : i64} {
  func.func @_scale_kernel(%arg0: memref<1x10xf32, #tpu.memory_space<vmem>>, %arg1: memref<1x3xf32, #tpu.memory_space<vmem>>, %arg2: memref<1x10xf32, #tpu.memory_space<vmem>>, %arg3: memref<1x3xf32, #tpu.memory_space<vmem>>) attributes {dimension_semantics = [], scalar_prefetch = 0 : i64, scratch_operands = 0 : i64, tpu.core_type = #tpu.core_type<tc>} {
    %c0 = arith.constant 0 : index
    %c0_0 = arith.constant 0 : index
    %0 = vector.load %arg0[%c0, %c0_0] : memref<1x10xf32, #tpu.memory_space<vmem>>, vector<1x10xf32>
    %cst = arith.constant 3.000000e-01 : f32
    %1 = vector.broadcast %cst : f32 to vector<1x10xf32>
    %2 = arith.mulf %0, %1 : vector<1x10xf32>
    %c0_1 = arith.constant 0 : index
    %c0_2 = arith.constant 0 : index
    %3 = vector.load %arg2[%c0_1, %c0_2] : memref<1x10xf32, #tpu.memory_space<vmem>>, vector<1x10xf32>
    tpu.vector_store %arg2[%c0_1, %c0_2], %2 {strides = array<i32>} : memref<1x10xf32, #tpu.memory_space<vmem>>, vector<1x10xf32>,
    %c0_3 = arith.constant 0 : index
    %c0_4 = arith.constant 0 : index
    %4 = vector.load %arg1[%c0_3, %c0_4] : memref<1x3xf32, #tpu.memory_space<vmem>>, vector<1x3xf32>
    %cst_5 = arith.constant 1.000000e-01 : f32
    %5 = vector.broadcast %cst_5 : f32 to vector<1x3xf32>
    %6 = arith.mulf %4, %5 : vector<1x3xf32>
    %c0_6 = arith.constant 0 : index
    %c0_7 = arith.constant 0 : index
    %7 = vector.load %arg3[%c0_6, %c0_7] : memref<1x3xf32, #tpu.memory_space<vmem>>, vector<1x3xf32>
    tpu.vector_store %arg3[%c0_6, %c0_7], %6 {strides = array<i32>} : memref<1x3xf32, #tpu.memory_space<vmem>>, vector<1x3xf32>,
    return
  }
}

</mosaic_0001>

<bundles_post_ra>
// kernel: tpu_custom_call.1
= control target key start
LH: loop header
LB: loop body
LE: loop exit
PB: predicated region body
PF: predicated region fallthrough
CT: control target
= control target key end

     0   :  { %9 = vsyncpa [#allocation3], 0  ;;  %s229_s0 = inlined_call_operand.hbm [shape: f32[1,10], index: 0, kind: input, shape index: {}]   ;;  %s230_s1 = inlined_call_operand.hbm [shape: f32[1,3], index: 1, kind: input, shape index: {}]   ;;  %s231_s2 = inlined_call_operand.hbm [shape: f32[1,10], index: 2, kind: output, shape index: {0}]   ;;  %s232_s3 = inlined_call_operand.hbm [shape: f32[1,3], index: 3, kind: output, shape index: {1}]  }
   0x1   :  { %10 = vsyncpa [#allocation6], 0 }
   0x2   :  { %11 = vsyncpa [#allocation4], 0 }
   0x3   :  { %12 = vsyncpa [#allocation9], 0  ;;  %s18_s14 = sshll.u32 %s229_s0, 4  ;;  %s193_s15 = smov [#allocation2]   ;;  %s19_s14 = int_to_ptr.hbm [resolvable:$true] %s18_s14 }
   0x4   :  { %s20_s16 = sshll.u32 %s193_s15, 4  ;;  %s29_s19 = sshll.u32 %s230_s1, 4  ;;  %s21_s16 = int_to_ptr.vmem [resolvable:$true] %s20_s16  ;;  %s30_s19 = int_to_ptr.hbm [resolvable:$true] %s29_s19 }
   0x5   :  { %23 = dma.hbm_to_vmem [thread:$0]  %s19_s14, 16, %s21_s16, [#allocation3]  }
   0x6   :  { %s194_s20 = smov [#allocation5]  }
   0x7   :  { %s31_s21 = sshll.u32 %s194_s20, 4  ;;  %s32_s21 = int_to_ptr.vmem [resolvable:$true] %s31_s21 }
   0x8   :  { %34 = dma.hbm_to_vmem [thread:$0]  %s30_s19, 16, %s32_s21, [#allocation6]  }
   0x9   :  { %185 = dma.done.wait [#allocation3], 16  }
   0xa   :  { %186 = vsyncadd [#allocation3], 4294967280 }
   0xb   :  { %187 = dma.done.wait [#allocation6], 16  }
   0xc   :  { %188 = vsyncadd [#allocation6], 4294967280  ;;  %s195_s22 = smov [#allocation7]   ;;  %s58_s25 = sshll.u32 %s231_s2, 4  ;;  %v43_v0 = vld [vmem:[#allocation2] sm:$0x1]  ;;  %s59_s25 = int_to_ptr.hbm [resolvable:$true] %s58_s25 }
   0xd   :  { %s56_s0 = sshll.u32 %s195_s22, 4  ;;  %s196_s26 = smov [#allocation8]   ;;  %vm45_vm0 = vcmask 73728   ;;  %v47_v1 = vld [vmem:[#allocation5] sm:$0x1]  ;;  %vm49_vm1 = vcmask 16384   ;;  %s57_s0 = int_to_ptr.vmem [resolvable:$true] %s56_s0 }
   0xe   :  { %s67_s27 = sshll.u32 %s196_s26, 4  ;;  %s69_s29 = sshll.u32 %s232_s3, 4  ;;  %v44_v2 = vmul.f32 0.3, %v43_v0  ;;  %v48_v3 = vmul.f32 0.1, %v47_v1  ;;  %s68_s27 = int_to_ptr.vmem [resolvable:$true] %s67_s27  ;;  %s70_s29 = int_to_ptr.hbm [resolvable:$true] %s69_s29 }
  0x10   :  { %46 = vst.msk [vmem:[#allocation7] sm:$0x1] %vm45_vm0, %v44_v2 }
  0x11   :  { %50 = vst.msk [vmem:[#allocation8] sm:$0x1] %vm49_vm1, %v48_v3  ;;  %61 = dma.vmem_to_hbm [thread:$0]  %s57_s0, 16, %s59_s25, [#allocation4]  }
  0x12   :  { %72 = dma.vmem_to_hbm [thread:$0]  %s68_s27, 16, %s70_s29, [#allocation9]  }
  0x13   :  { %189 = dma.done.wait [#allocation4], 16  }
  0x14   :  { %190 = vsyncadd [#allocation4], 4294967280 }
  0x15   :  { %191 = dma.done.wait [#allocation9], 16  }
  0x16   :  { %192 = vsyncadd [#allocation9], 4294967280 }
  0x17   :  { %81 = vsyncpa [#allocation3], 1 }
  0x18   :  { %82 = vsyncpa [#allocation6], 1 }
  0x19   :  { %83 = vsyncpa [#allocation4], 1 }
  0x1a   :  { %84 = vsyncpa [#allocation9], 1 }

</bundles_post_ra>
